<compile_context>
chip_gen: v6e
topology: v6e:2x2x1
jax: 0.10.0
libtpu: 0.0.40
codegen_flags: <defaults>
</compile_context>

<pallas_src>
import jax
import jax.numpy as jnp
from jax.experimental import pallas as pl
from jax.experimental.pallas import tpu as pltpu


def _round_up(x, m):
    return ((x + m - 1) // m) * m


def _generator_kernel(x_ref, w1_ref, b1_ref, w2_ref, b2_ref, o_ref):
    # x_ref:  (bm, Z)      bf16   batch tile of latents
    # w1_ref: (Z, H)       bf16   first linear weight (in, out), grid-invariant
    # b1_ref: (1, H)       f32    first linear bias, grid-invariant
    # w2_ref: (H, D_pad)   bf16   full second linear weight, grid-invariant
    # b2_ref: (1, D_pad)   f32    full second linear bias, grid-invariant
    # o_ref:  (bm, D_pad)         output tile
    x = x_ref[...]
    # bf16 x bf16 matmul, f32 accumulation on the MXU.
    h = jnp.dot(x, w1_ref[...], preferred_element_type=jnp.float32) + b1_ref[...]
    # LeakyReLU(negative_slope=0.01), f32 on the VPU.
    h = jnp.where(h > 0, h, 0.01 * h)
    y = jnp.dot(h.astype(w2_ref.dtype), w2_ref[...],
                preferred_element_type=jnp.float32) + b2_ref[...]
    o_ref[...] = jnp.tanh(y).astype(o_ref.dtype)


def prepare_generator_params(w1, b1, w2, b2, *, lane_tile=128):
    """One-time weight preparation (cast to bf16, pad D to a lane multiple).

    Call once and reuse across forward passes so the cast/pad ops are not
    re-executed per call.
    """
    Z, H = w1.shape
    H2, D = w2.shape
    assert H == H2 and b1.shape == (H,) and b2.shape == (D,)
    D_pad = _round_up(D, lane_tile)
    return {
        "w1": w1.astype(jnp.bfloat16),
        "b1": b1.astype(jnp.float32).reshape(1, H),
        "w2": jnp.pad(w2.astype(jnp.bfloat16), ((0, 0), (0, D_pad - D))),
        "b2": jnp.pad(b2.astype(jnp.float32).reshape(1, D),
                      ((0, 0), (0, D_pad - D))),
        "img_dim": D,
    }


def generator_forward(x, params, *, batch_tile=1024, out_dtype=jnp.float32):
    """Fused MLP generator forward.

    x:      (B, z_dim) float32 latents
    params: output of prepare_generator_params
    returns (B, img_dim) out_dtype.  Pass out_dtype=jnp.bfloat16 to halve the
    dominant HBM writeback stream when the consumer tolerates bf16.
    """
    B, Z = x.shape
    w1_b, b1_2d = params["w1"], params["b1"]
    w2_p, b2_p = params["w2"], params["b2"]
    D = params["img_dim"]
    Zw, H = w1_b.shape
    Hw, D_pad = w2_p.shape
    assert Z == Zw and H == Hw

    # Batch tile: multiple of 16 (bf16 packs 16 rows per vreg), never bigger
    # than the (16-aligned) batch, and never bigger than the requested tile.
    bm = min(max(16, _round_up(batch_tile, 16)), _round_up(B, 16))
    B_pad = _round_up(B, bm)
    # If the grid would be a single tile, halve bm (down to 16) so both v7x
    # TensorCores get a batch tile.  No effect on single-TC v5e/v6e.
    while B_pad // bm < 2 and bm > 16:
        bm = max(16, _round_up(bm // 2, 16))
        B_pad = _round_up(B, bm)

    # Only the latents are cast/padded per call.
    x_p = jnp.pad(x.astype(jnp.bfloat16), ((0, B_pad - B), (0, 0)))

    grid = (B_pad // bm,)

    # Advisory cost estimate: every operand is streamed from HBM exactly once
    # (w1/b1/w2/b2 are grid-invariant), output written once.
    flops = 2 * B_pad * (Z * H + H * D_pad)
    transcendentals = B_pad * D_pad  # tanh
    bytes_accessed = (
        x_p.size * 2 + w1_b.size * 2 + b1_2d.size * 4 +
        w2_p.size * 2 + b2_p.size * 4 +
        B_pad * D_pad * jnp.dtype(out_dtype).itemsize)

    out = pl.pallas_call(
        _generator_kernel,
        out_shape=jax.ShapeDtypeStruct((B_pad, D_pad), out_dtype),
        grid_spec=pltpu.PrefetchScalarGridSpec(
            num_scalar_prefetch=0,
            grid=grid,
            in_specs=[
                pl.BlockSpec((bm, Z), lambda i: (i, 0)),
                # Grid-invariant weights/biases: Pallas does not re-DMA
                # unchanged blocks, so these stay resident in VMEM.
                pl.BlockSpec((Z, H), lambda i: (0, 0)),
                pl.BlockSpec((1, H), lambda i: (0, 0)),
                pl.BlockSpec((H, D_pad), lambda i: (0, 0)),
                pl.BlockSpec((1, D_pad), lambda i: (0, 0)),
            ],
            out_specs=pl.BlockSpec((bm, D_pad), lambda i: (i, 0)),
        ),
        compiler_params=pltpu.CompilerParams(
            dimension_semantics=("parallel",),
        ),
        cost_estimate=pl.CostEstimate(
            flops=int(flops),
            transcendentals=int(transcendentals),
            bytes_accessed=int(bytes_accessed),
        ),
    )(x_p, w1_b, b1_2d, w2_p, b2_p)

    return out[:B, :D]


def init_generator_params(key, z_dim=32, hidden=256, img_dim=28 * 28):
    """Deterministic init mirroring nn.Linear default (uniform +- 1/sqrt(fan_in))."""
    k1, k2, k3, k4 = jax.random.split(key, 4)
    lim1 = 1.0 / jnp.sqrt(z_dim)
    lim2 = 1.0 / jnp.sqrt(hidden)
    # Stored as (in, out) == transpose of PyTorch's (out, in) weight layout.
    w1 = jax.random.uniform(k1, (z_dim, hidden), jnp.float32, -lim1, lim1)
    b1 = jax.random.uniform(k2, (hidden,), jnp.float32, -lim1, lim1)
    w2 = jax.random.uniform(k3, (hidden, img_dim), jnp.float32, -lim2, lim2)
    b2 = jax.random.uniform(k4, (img_dim,), jnp.float32, -lim2, lim2)
    return w1, b1, w2, b2


def _reference_forward(x, w1, b1, w2, b2, compute_dtype=jnp.float32):
    """Pure-JAX reference; compute_dtype=bf16 mirrors the kernel's precision."""
    xd = x.astype(compute_dtype)
    h = jnp.dot(xd, w1.astype(compute_dtype),
                preferred_element_type=jnp.float32) + b1
    h = jnp.where(h > 0, h, 0.01 * h)
    y = jnp.dot(h.astype(compute_dtype), w2.astype(compute_dtype),
                preferred_element_type=jnp.float32) + b2
    return jnp.tanh(y)


if __name__ == "__main__":
    z_dim, hidden, img_dim = 32, 256, 28 * 28
    batch = 8

    key = jax.random.PRNGKey(0)
    k_params, k_x = jax.random.split(key)
    w1, b1, w2, b2 = init_generator_params(k_params, z_dim, hidden, img_dim)
    x = jax.random.normal(k_x, (batch, z_dim), jnp.float32)

    params = prepare_generator_params(w1, b1, w2, b2)
    out = generator_forward(x, params)
    out = jax.block_until_ready(out)

    assert out.shape == (batch, img_dim)
    assert out.dtype == jnp.float32

    # Same-precision (bf16 inputs, f32 accumulation) reference: tight check.
    ref_bf16 = _reference_forward(x, w1, b1, w2, b2, compute_dtype=jnp.bfloat16)
    assert jnp.allclose(out, ref_bf16, atol=5e-3, rtol=5e-3), float(
        jnp.max(jnp.abs(out - ref_bf16)))

    # Full-f32 reference: loose sanity check (bf16 weight quantization only;
    # intentional precision choice for a GAN generator).
    ref_f32 = _reference_forward(x, w1, b1, w2, b2, compute_dtype=jnp.float32)
    assert jnp.allclose(out, ref_f32, atol=1e-1, rtol=1e-1), float(
        jnp.max(jnp.abs(out - ref_f32)))

    print("KERNEL_OK")
</pallas_src>

<mosaic_0001>
module attributes {stable_mosaic.version = 11 : i64} {
  func.func @_generator_kernel(%arg0: i32, %arg1: memref<16x32xbf16, #tpu.memory_space<vmem>>, %arg2: memref<32x256xbf16, #tpu.memory_space<vmem>>, %arg3: memref<1x256xf32, #tpu.memory_space<vmem>>, %arg4: memref<256x896xbf16, #tpu.memory_space<vmem>>, %arg5: memref<1x896xf32, #tpu.memory_space<vmem>>, %arg6: memref<16x896xf32, #tpu.memory_space<vmem>>) attributes {dimension_semantics = [#tpu.dimension_semantics<parallel>], iteration_bounds = array<i64: 1>, scalar_prefetch = 0 : i64, scratch_operands = 0 : i64, tpu.core_type = #tpu.core_type<tc>, window_params = [{transform_indices = @transform_0, window_bounds = array<i64: 16, 32>}, {pipeline_mode = #tpu.pipeline_mode<synchronous>, transform_indices = @transform_1, window_bounds = array<i64: 32, 256>}, {pipeline_mode = #tpu.pipeline_mode<synchronous>, transform_indices = @transform_2, window_bounds = array<i64: 1, 256>}, {pipeline_mode = #tpu.pipeline_mode<synchronous>, transform_indices = @transform_3, window_bounds = array<i64: 256, 896>}, {pipeline_mode = #tpu.pipeline_mode<synchronous>, transform_indices = @transform_4, window_bounds = array<i64: 1, 896>}, {transform_indices = @transform_5, window_bounds = array<i64: 16, 896>}]} {
    %c0 = arith.constant 0 : index
    %c0_0 = arith.constant 0 : index
    %0 = vector.load %arg1[%c0, %c0_0] : memref<16x32xbf16, #tpu.memory_space<vmem>>, vector<16x32xbf16>
    %c0_1 = arith.constant 0 : index
    %c0_2 = arith.constant 0 : index
    %1 = vector.load %arg2[%c0_1, %c0_2] : memref<32x256xbf16, #tpu.memory_space<vmem>>, vector<32x256xbf16>
    %cst = arith.constant dense<0.000000e+00> : vector<16x256xf32>
    %2 = tpu.matmul %0, %1, %cst {dimension_numbers = #tpu.dot_dimension_numbers<[1], [0], [0], [1], [0, 0, 1, 1], [], []>} : vector<16x32xbf16>, vector<32x256xbf16>, vector<16x256xf32> -> vector<16x256xf32>
    %c0_3 = arith.constant 0 : index
    %c0_4 = arith.constant 0 : index
    %3 = vector.load %arg3[%c0_3, %c0_4] : memref<1x256xf32, #tpu.memory_space<vmem>>, vector<1x256xf32>
    %4 = vector.broadcast %3 : vector<1x256xf32> to vector<16x256xf32>
    %5 = arith.addf %2, %4 : vector<16x256xf32>
    %cst_5 = arith.constant 0.000000e+00 : f32
    %6 = vector.broadcast %cst_5 : f32 to vector<16x256xf32>
    %7 = arith.cmpf ogt, %5, %6 : vector<16x256xf32>
    %cst_6 = arith.constant 0.00999999977 : f32
    %8 = vector.broadcast %cst_6 : f32 to vector<16x256xf32>
    %9 = arith.mulf %8, %5 : vector<16x256xf32>
    %10 = arith.select %7, %5, %9 : vector<16x256xi1>, vector<16x256xf32>
    %11 = arith.truncf %10 : vector<16x256xf32> to vector<16x256xbf16>
    %c0_7 = arith.constant 0 : index
    %c0_8 = arith.constant 0 : index
    %12 = vector.load %arg4[%c0_7, %c0_8] : memref<256x896xbf16, #tpu.memory_space<vmem>>, vector<256x896xbf16>
    %cst_9 = arith.constant dense<0.000000e+00> : vector<16x896xf32>
    %13 = tpu.matmul %11, %12, %cst_9 {dimension_numbers = #tpu.dot_dimension_numbers<[1], [0], [0], [1], [0, 0, 1, 1], [], []>} : vector<16x256xbf16>, vector<256x896xbf16>, vector<16x896xf32> -> vector<16x896xf32>
    %c0_10 = arith.constant 0 : index
    %c0_11 = arith.constant 0 : index
    %14 = vector.load %arg5[%c0_10, %c0_11] : memref<1x896xf32, #tpu.memory_space<vmem>>, vector<1x896xf32>
    %15 = vector.broadcast %14 : vector<1x896xf32> to vector<16x896xf32>
    %16 = arith.addf %13, %15 : vector<16x896xf32>
    %17 = math.tanh %16 : vector<16x896xf32>
    %c0_12 = arith.constant 0 : index
    %c0_13 = arith.constant 0 : index
    %18 = vector.load %arg6[%c0_12, %c0_13] : memref<16x896xf32, #tpu.memory_space<vmem>>, vector<16x896xf32>
    tpu.vector_store %arg6[%c0_12, %c0_13], %17 {strides = array<i32>} : memref<16x896xf32, #tpu.memory_space<vmem>>, vector<16x896xf32>,
    return
  }
  func.func @transform_0(%arg0: i32) -> (i32, i32) {
    %c0_i32 = arith.constant 0 : i32
    %c0_i32_0 = arith.constant 0 : i32
    return %arg0, %c0_i32 : i32, i32
  }
  func.func @transform_1(%arg0: i32) -> (i32, i32) {
    %c0_i32 = arith.constant 0 : i32
    %c0_i32_0 = arith.constant 0 : i32
    %c0_i32_1 = arith.constant 0 : i32
    return %c0_i32, %c0_i32_0 : i32, i32
  }
  func.func @transform_2(%arg0: i32) -> (i32, i32) {
    %c0_i32 = arith.constant 0 : i32
    %c0_i32_0 = arith.constant 0 : i32
    %c0_i32_1 = arith.constant 0 : i32
    return %c0_i32, %c0_i32_0 : i32, i32
  }
  func.func @transform_3(%arg0: i32) -> (i32, i32) {
    %c0_i32 = arith.constant 0 : i32
    %c0_i32_0 = arith.constant 0 : i32
    %c0_i32_1 = arith.constant 0 : i32
    return %c0_i32, %c0_i32_0 : i32, i32
  }
  func.func @transform_4(%arg0: i32) -> (i32, i32) {
    %c0_i32 = arith.constant 0 : i32
    %c0_i32_0 = arith.constant 0 : i32
    %c0_i32_1 = arith.constant 0 : i32
    return %c0_i32, %c0_i32_0 : i32, i32
  }
  func.func @transform_5(%arg0: i32) -> (i32, i32) {
    %c0_i32 = arith.constant 0 : i32
    %c0_i32_0 = arith.constant 0 : i32
    return %arg0, %c0_i32 : i32, i32
  }
}

</mosaic_0001>

<bundles_post_ra>
// kernel: tpu_custom_call.1
= control target key start
LH: loop header
LB: loop body
LE: loop exit
PB: predicated region body
PF: predicated region fallthrough
CT: control target
= control target key end

     0   :  { %10 = vsyncpa [#allocation3], 0  ;;  %s1688_s0 = inlined_call_operand.hbm [shape: bf16[16,32], index: 0, kind: input, shape index: {}]   ;;  %s1689_s1 = inlined_call_operand.hbm [shape: bf16[32,256], index: 1, kind: input, shape index: {}]   ;;  %s1690_s2 = inlined_call_operand.hbm [shape: f32[1,256], index: 2, kind: input, shape index: {}]   ;;  %s1691_s3 = inlined_call_operand.hbm [shape: bf16[256,896], index: 3, kind: input, shape index: {}]   ;;  %s1692_s4 = inlined_call_operand.vmem [shape: f32[1,896], index: 4, kind: input, shape index: {}]   ;;  %s1693_s5 = inlined_call_operand.hbm [shape: f32[16,896], index: 5, kind: output, shape index: {}]  }
   0x1   :  { %11 = vsyncpa [#allocation6], 0 }
   0x2   :  { %12 = vsyncpa [#allocation9], 0 }
   0x3   :  { %13 = vsyncpa [#allocation4], 0  ;;  %s1594_s18 = smov [#allocation5]  }
   0x4   :  { %s31_s19 = sshll.u32 %s1594_s18, 4  ;;  %s32_s19 = int_to_ptr.vmem [resolvable:$true] %s31_s19 }
   0x5   :  { %s1494_s20 = scalar_lea.vmem %s32_s19, 512  ;;  %p1499_p1 = scmp.lt.s32.totalorder %s32_s19, %s32_s19 }
   0x6   :  { %p1495_p0 = scmp.ne.s32.totalorder %s32_s19, %s1494_s20  ;;  %p1500_p2 = scmp.lt.s32.totalorder %s1494_s20, %s1494_s20 }
   0x8   :  { %p1501_p3 = por %p1500_p2, %p1499_p1 }
   0xa   :  { %p1502_p4 = pnand %p1501_p3, %p1495_p0 }
   0xc   :  { %1505 = shalt.err (!%p1502_p4)
}
   0xd   :  { %s1595_s21 = smov 128   ;;  %s1596_s22 = smov 8  }
   0xe   :  { %37 = dma.hbm_to_vmem [thread:$0]  %s1689_s1, 512, %s32_s19, [#allocation6], %s1595_s21, %s1595_s21, %s1596_s22  }
   0xf   :  { %s1597_s25 = smov [#allocation2]  }
  0x10   :  { %s19_s26 = sshll.u32 %s1597_s25, 4  ;;  %s20_s26 = int_to_ptr.vmem [resolvable:$true] %s19_s26 }
  0x11   :  { %s1514_s27 = scalar_lea.vmem %s20_s26, 128  ;;  %p1519_p6 = scmp.lt.s32.totalorder %s20_s26, %s20_s26 }
  0x12   :  { %p1515_p5 = scmp.ne.s32.totalorder %s20_s26, %s1514_s27  ;;  %p1520_p7 = scmp.lt.s32.totalorder %s1514_s27, %s1514_s27 }
  0x14   :  { %p1521_p8 = por %p1520_p7, %p1519_p6 }
  0x16   :  { %p1522_p9 = pnand %p1521_p8, %p1515_p5 }
  0x18   :  { %1525 = shalt.err (!%p1522_p9)
}
  0x19   :  { %s1598_s28 = smov 64   ;;  %s1599_s29 = smov 4  }
  0x1a   :  { %25 = dma.hbm_to_vmem [thread:$0]  %s1688_s0, 128, %s20_s26, [#allocation3], %s1598_s28, %s1598_s28, %s1599_s29  }
  0x1b   :  { %s1600_s7 = smov [#allocation7]   ;;  %s1601_s9 = smov [#allocation8]  }
  0x1c   :  { %s44_s8 = sshll.u32 %s1600_s7, 4  ;;  %s53_s1 = sshll.u32 %s1601_s9, 4  ;;  %s45_s8 = int_to_ptr.vmem [resolvable:$true] %s44_s8  ;;  %s54_s1 = int_to_ptr.vmem [resolvable:$true] %s53_s1 }
  0x1d   :  { %s1534_s10 = scalar_lea.vmem %s45_s8, 32  ;;  %p1539_p11 = scmp.lt.s32.totalorder %s45_s8, %s45_s8 }
  0x1e   :  { %p1535_p10 = scmp.ne.s32.totalorder %s45_s8, %s1534_s10  ;;  %p1540_p12 = scmp.lt.s32.totalorder %s1534_s10, %s1534_s10 }
  0x20   :  { %p1541_p13 = por %p1540_p12, %p1539_p11 }
  0x22   :  { %p1542_p0 = pnand %p1541_p13, %p1535_p10 }
  0x24   :  { %1545 = shalt.err (!%p1542_p0)
}
  0x25   :  { %47 = dma.hbm_to_vmem [thread:$0]  %s1690_s2, 32, %s45_s8, [#allocation6]  }
  0x26   :  { %s1554_s13 = scalar_lea.vmem %s54_s1, 14336  ;;  %p1559_p2 = scmp.lt.s32.totalorder %s54_s1, %s54_s1 }
  0x27   :  { %p1555_p1 = scmp.ne.s32.totalorder %s54_s1, %s1554_s13  ;;  %p1560_p3 = scmp.lt.s32.totalorder %s1554_s13, %s1554_s13 }
  0x29   :  { %p1561_p4 = por %p1560_p3, %p1559_p2 }
  0x2b   :  { %p1562_p5 = pnand %p1561_p4, %p1555_p1 }
  0x2d   :  { %1565 = shalt.err (!%p1562_p5)
}
  0x2e   :  { %s1602_s0 = smov 448   ;;  %s1603_s14 = smov 28  }
  0x2f   :  { %59 = dma.hbm_to_vmem [thread:$0]  %s1691_s3, 14336, %s54_s1, [#allocation9], %s1602_s0, %s1602_s0, %s1603_s14  }
  0x30   :  { %1586 = dma.done.wait [#allocation3], 128  }
  0x31   :  { %1587 = vsyncadd [#allocation3], 4294967168 }
  0x32   :  { %1588 = dma.done.wait [#allocation6], 544  }
  0x33   :  { %1589 = vsyncadd [#allocation6], 4294966752 }
  0x34   :  { %1590 = dma.done.wait [#allocation9], 14336  }
  0x35   :  { %1591 = vsyncadd [#allocation9], 4294952960  ;;  %v1604_v0 = vmov 0   ;;  %v1291_v1 = vld [vmem:[#allocation5 + $0x14] ss:$8 sps:$4 sm:$0xff]   ;;  %vm118_vm0 = vcmask 261120  }
  0x36   :  { %154 = vmatprep.mubr.bf16.mxu0 %v1604_v0  ;;  %v1293_v2 = vld [vmem:[#allocation5 + $0x10] ss:$8 sps:$4 sm:$0xff]   ;;  %134 = vmatprep.subr.bf16.mxu0 %v1291_v1  ;;  %v1294_v3 = vld [vmem:[#allocation5 + $0x4] ss:$8 sps:$4 sm:$0xff]   ;;  %v1296_v4 = vld [vmem:[#allocation5] ss:$8 sps:$4 sm:$0xff]  }
  0x37   :  { %135 = vmatpush1.bf16.msra.mxu0 %v1293_v2  ;;  %v1297_v5 = vld [vmem:[#allocation2] sm:$0xff]   ;;  %v1298_v6 = vld [vmem:[#allocation8 + $0x18c] ss:$28 sps:$4 sm:$0xff]   ;;  %v1314_v15 = vld [vmem:[#allocation8 + $0x124] ss:$28 sps:$4 sm:$0xff]  }
  0x38   :  { %136 = vmatprep.subr.bf16.mxu0 %v1294_v3  ;;  %v1300_v7 = vld [vmem:[#allocation8 + $0x190] ss:$28 sps:$4 sm:$0xff]   ;;  %920 = vmatprep.subr.bf16.mxu1 %v1298_v6  ;;  %v1303_v9 = vld [vmem:[#allocation8 + $0x188] ss:$28 sps:$4 sm:$0xff]   ;;  %v1308_v11 = vld [vmem:[#allocation8 + $0x15c] ss:$28 sps:$4 sm:$0xff]  }
  0x39   :  { %v1302_v8 = vld [vmem:[#allocation8 + $0x194] ss:$28 sps:$4 sm:$0xff]   ;;  %921 = vmatpush1.bf16.msra.mxu1 %v1303_v9  ;;  %v1310_v13 = vld [vmem:[#allocation8 + $0x11c] ss:$28 sps:$4 sm:$0xff]   ;;  %v1316_v17 = vld [vmem:[#allocation8 + $0xe4] ss:$28 sps:$4 sm:$0xff]  }
  0x3a   :  { %v1304_v10 = vld [vmem:[#allocation8 + $0x154] ss:$28 sps:$4 sm:$0xff]   ;;  %v1312_v18 = vld [vmem:[#allocation8 + $0x120] ss:$28 sps:$4 sm:$0xff]   ;;  %v1320_v19 = vld [vmem:[#allocation8 + $0xec] ss:$28 sps:$4 sm:$0xff]  }
  0x3b   :  { %137 = vmatpush1.bf16.msra.mxu0 %v1296_v4  ;;  %v1309_v12 = vld [vmem:[#allocation8 + $0x150] ss:$28 sps:$4 sm:$0xff]   ;;  %922 = vmatprep.subr.bf16.mxu1 %v1304_v10  ;;  %v1306_v14 = vld [vmem:[#allocation8 + $0x158] ss:$28 sps:$4 sm:$0xff]   ;;  %v1321_v20 = vld [vmem:[#allocation8 + $0xe0] ss:$28 sps:$4 sm:$0xff]  }
  0x3c   :  { %963 = vmatprep.subr.bf16.mxu0 %v1302_v8  ;;  %v1315_v16 = vld [vmem:[#allocation8 + $0x118] ss:$28 sps:$4 sm:$0xff]   ;;  %v1322_v21 = vld [vmem:[#allocation8 + $0xac] ss:$28 sps:$4 sm:$0xff]   ;;  %v1338_v31 = vld [vmem:[#allocation8 + $0x44] ss:$28 sps:$4 sm:$0xff]   ;;  %v83_v8 = vlaneseq }
  0x3d   :  { %923 = vmatpush1.bf16.msra.mxu1 %v1309_v12  ;;  %v1318_v22 = vld [vmem:[#allocation8 + $0xe8] ss:$28 sps:$4 sm:$0xff]   ;;  %v1326_v23 = vld [vmem:[#allocation8 + $0xb4] ss:$28 sps:$4 sm:$0xff]   ;;  %v1332_v27 = vld [vmem:[#allocation8 + $0x7c] ss:$28 sps:$4 sm:$0xff]  }
  0x3e   :  { %1142 = vmatmul.mubr.msk.bf16.vlgmr.msra.gmra.mxu0 %vm118_vm0, %v1297_v5  ;;  %924 = vmatprep.subr.bf16.mxu1 %v1310_v13  ;;  %v1327_v24 = vld [vmem:[#allocation8 + $0xa8] ss:$28 sps:$4 sm:$0xff]   ;;  %v1328_v25 = vld [vmem:[#allocation8 + $0x74] ss:$28 sps:$4 sm:$0xff]   ;;  %v1334_v29 = vld [vmem:[#allocation8 + $0x3c] ss:$28 sps:$4 sm:$0xff]  }
  0x3f   :  { %964 = vmatpush1.bf16.msra.mxu0 %v1300_v7  ;;  %v1324_v26 = vld [vmem:[#allocation8 + $0xb0] ss:$28 sps:$4 sm:$0xff]   ;;  %v1330_v30 = vld [vmem:[#allocation8 + $0x78] ss:$28 sps:$4 sm:$0xff]   ;;  %v1340_v33 = vld [vmem:[#allocation8 + $0x4] ss:$28 sps:$4 sm:$0xff]  }
  0x40   :  { %965 = vmatprep.subr.bf16.mxu0 %v1308_v11  ;;  %v1333_v28 = vld [vmem:[#allocation8 + $0x70] ss:$28 sps:$4 sm:$0xff]   ;;  %v1339_v32 = vld [vmem:[#allocation8 + $0x38] ss:$28 sps:$4 sm:$0xff]   ;;  %v1336_v34 = vld [vmem:[#allocation8 + $0x40] ss:$28 sps:$4 sm:$0xff]  }
  0x41   :  { %925 = vmatpush1.bf16.msra.mxu1 %v1315_v16  ;;  %v1344_v35 = vld [vmem:[#allocation8 + $0xc] ss:$28 sps:$4 sm:$0xff]   ;;  %v1345_v36 = vld [vmem:[#allocation8] ss:$28 sps:$4 sm:$0xff]   ;;  %v1350_v39 = vld [vmem:[#allocation8 + $0x354] ss:$28 sps:$4 sm:$0xff]  }
  0x42   :  { %926 = vmatprep.subr.bf16.mxu1 %v1316_v17  ;;  %v1346_v37 = vld [vmem:[#allocation8 + $0x34c] ss:$28 sps:$4 sm:$0xff]   ;;  %v1352_v42 = vld [vmem:[#allocation8 + $0x314] ss:$28 sps:$4 sm:$0xff]   ;;  %v1356_v43 = vld [vmem:[#allocation8 + $0x31c] ss:$28 sps:$4 sm:$0xff]  }
  0x43   :  { %966 = vmatpush1.bf16.msra.mxu0 %v1306_v14  ;;  %v1342_v38 = vld [vmem:[#allocation8 + $0x8] ss:$28 sps:$4 sm:$0xff]   ;;  %v1348_v41 = vld [vmem:[#allocation8 + $0x350] ss:$28 sps:$4 sm:$0xff]   ;;  %v1358_v45 = vld [vmem:[#allocation8 + $0x2dc] ss:$28 sps:$4 sm:$0xff]  }
  0x44   :  { %967 = vmatprep.subr.bf16.mxu0 %v1314_v15  ;;  %v1351_v40 = vld [vmem:[#allocation8 + $0x348] ss:$28 sps:$4 sm:$0xff]   ;;  %v1357_v44 = vld [vmem:[#allocation8 + $0x310] ss:$28 sps:$4 sm:$0xff]   ;;  %v1354_v46 = vld [vmem:[#allocation8 + $0x318] ss:$28 sps:$4 sm:$0xff]  }
  0x45   :  { %927 = vmatpush1.bf16.msra.mxu1 %v1321_v20  ;;  %v1362_v47 = vld [vmem:[#allocation8 + $0x2e4] ss:$28 sps:$4 sm:$0xff]   ;;  %v1363_v48 = vld [vmem:[#allocation8 + $0x2d8] ss:$28 sps:$4 sm:$0xff]   ;;  %v1368_v51 = vld [vmem:[#allocation8 + $0x2ac] ss:$28 sps:$4 sm:$0xff]  }
  0x46   :  { %928 = vmatprep.subr.bf16.mxu1 %v1322_v21  ;;  %v1364_v49 = vld [vmem:[#allocation8 + $0x2a4] ss:$28 sps:$4 sm:$0xff]   ;;  %v1370_v53 = vld [vmem:[#allocation8 + $0x26c] ss:$28 sps:$4 sm:$0xff]   ;;  %v1374_v55 = vld [vmem:[#allocation8 + $0x274] ss:$28 sps:$4 sm:$0xff]  }
  0x47   :  { %968 = vmatpush1.bf16.msra.mxu0 %v1312_v18  ;;  %v1360_v50 = vld [vmem:[#allocation8 + $0x2e0] ss:$28 sps:$4 sm:$0xff]   ;;  %v1366_v54 = vld [vmem:[#allocation8 + $0x2a8] ss:$28 sps:$4 sm:$0xff]   ;;  %v1372_v57 = vld [vmem:[#allocation8 + $0x270] ss:$28 sps:$4 sm:$0xff]  }
  0x48   :  { %969 = vmatprep.subr.bf16.mxu0 %v1320_v19  ;;  %v1369_v52 = vld [vmem:[#allocation8 + $0x2a0] ss:$28 sps:$4 sm:$0xff]   ;;  %v1375_v56 = vld [vmem:[#allocation8 + $0x268] ss:$28 sps:$4 sm:$0xff]   ;;  %v1376_v58 = vld [vmem:[#allocation8 + $0x234] ss:$28 sps:$4 sm:$0xff]  }
  0x49   :  { %929 = vmatpush1.bf16.msra.mxu1 %v1327_v24  ;;  %v1380_v59 = vld [vmem:[#allocation8 + $0x23c] ss:$28 sps:$4 sm:$0xff]   ;;  %v1381_v61 = vld [vmem:[#allocation8 + $0x230] ss:$28 sps:$4 sm:$0xff]   ;;  %v1386_v63 = vld [vmem:[#allocation8 + $0x204] ss:$28 sps:$4 sm:$0xff]  }
  0x4a   :  { %930 = vmatprep.subr.bf16.mxu1 %v1328_v25  ;;  %v1378_v60 = vld [vmem:[#allocation8 + $0x238] ss:$28 sps:$4 sm:$0xff]   ;;  %v1384_v0 = vld [vmem:[#allocation8 + $0x200] ss:$28 sps:$4 sm:$0xff]   ;;  %v1392_v3 = vld [vmem:[#allocation8 + $0x1cc] ss:$28 sps:$4 sm:$0xff]  }
  0x4b   :  { %970 = vmatpush1.bf16.msra.mxu0 %v1318_v22  ;;  %v1382_v62 = vld [vmem:[#allocation8 + $0x1fc] ss:$28 sps:$4 sm:$0xff]   ;;  %v1388_v2 = vld [vmem:[#allocation8 + $0x1c4] ss:$28 sps:$4 sm:$0xff]   ;;  %v1650_v9 = vshrl.u32 %v83_v8, 7 }
  0x4c   :  { %971 = vmatprep.subr.bf16.mxu0 %v1326_v23  ;;  %v1387_v1 = vld [vmem:[#allocation8 + $0x1f8] ss:$28 sps:$4 sm:$0xff]   ;;  %v1390_v4 = vld [vmem:[#allocation8 + $0x1c8] ss:$28 sps:$4 sm:$0xff]   ;;  %v1393_v5 = vld [vmem:[#allocation8 + $0x1c0] ss:$28 sps:$4 sm:$0xff]  }
  0x4d   :  { %931 = vmatpush1.bf16.msra.mxu1 %v1333_v28  ;;  %v1396_v6 = vld [vmem:[#allocation8 + $0x19c] ss:$28 sps:$4 sm:$0xff]   ;;  %v89_v10 = vsub.s32 1, %v1650_v9  ;;  %v85_v11 = vsub.s32 0, %v1650_v9 }
  0x4e   :  { %932 = vmatprep.subr.bf16.mxu1 %v1334_v29  ;;  %v1397_v7 = vld [vmem:[#allocation8 + $0x360] ss:$28 sps:$4 sm:$0xff]   ;;  %v1446_v8 = vld [vmem:[#allocation8 + $0x278] ss:$28 sps:$4 sm:$0xff]  }
  0x4f   :  { %972 = vmatpush1.bf16.msra.mxu0 %v1324_v26  ;;  %v81_v12 = vld [vmem:[#allocation7] sm:$0x3] }
  0x50   :  { %973 = vmatprep.subr.bf16.mxu0 %v1332_v27  ;;  %v90_v13 = vrot.slane %v81_v12, %v89_v10  ;;  %v86_v14 = vrot.slane %v81_v12, %v85_v11  ;;  %v1451_v12 = vld [vmem:[#allocation8 + $0x244] ss:$28 sps:$4 sm:$0xff]  }
  0x51   :  { %933 = vmatpush1.bf16.msra.mxu1 %v1339_v32  ;;  %v1394_v32 = vld [vmem:[#allocation8 + $0x198] ss:$28 sps:$4 sm:$0xff]  }
  0x52   :  { %934 = vmatprep.subr.bf16.mxu1 %v1340_v33  ;;  %v1398_v33 = vld [vmem:[#allocation8 + $0x1a0] ss:$28 sps:$4 sm:$0xff]  }
  0x53   :  { %974 = vmatpush1.bf16.msra.mxu0 %v1330_v30 }
  0x54   :  { %975 = vmatprep.subr.bf16.mxu0 %v1338_v31 }
  0x55   :  { %935 = vmatpush1.bf16.msra.mxu1 %v1345_v36  ;;  %v1402_v36 = vld [vmem:[#allocation8 + $0x328] ss:$28 sps:$4 sm:$0xff]  }
  0x56   :  { %936 = vmatprep.subr.bf16.mxu1 %v1346_v37  ;;  %v1399_v37 = vld [vmem:[#allocation8 + $0x160] ss:$28 sps:$4 sm:$0xff]  }
  0x57   :  { %976 = vmatpush1.bf16.msra.mxu0 %v1336_v34 }
  0x58   :  { %977 = vmatprep.subr.bf16.mxu0 %v1344_v35  ;;  %v1401_v35 = vld [vmem:[#allocation8 + $0x164] ss:$28 sps:$4 sm:$0xff]  }
  0x59   :  { %937 = vmatpush2.bf16.msra.mxu1 %v1351_v40  ;;  %v1407_v40 = vld [vmem:[#allocation8 + $0x2f0] ss:$28 sps:$4 sm:$0xff]  }
  0x5a   :  { %938 = vmatprep.subr.bf16.mxu1 %v1352_v42  ;;  %v1408_v42 = vld [vmem:[#allocation8 + $0x130] ss:$28 sps:$4 sm:$0xff]  }
  0x5b   :  { %978 = vmatpush1.bf16.msra.mxu0 %v1342_v38  ;;  %v1403_v38 = vld [vmem:[#allocation8 + $0x168] ss:$28 sps:$4 sm:$0xff]  }
  0x5c   :  { %979 = vmatprep.subr.bf16.mxu0 %v1350_v39  ;;  %v1406_v39 = vld [vmem:[#allocation8 + $0x12c] ss:$28 sps:$4 sm:$0xff]  }
  0x5d   :  { %939 = vmatpush2.bf16.msra.mxu1 %v1357_v44  ;;  %v1412_v44 = vld [vmem:[#allocation8 + $0x2b8] ss:$28 sps:$4 sm:$0xff]  }
  0x5e   :  { %940 = vmatprep.subr.bf16.mxu1 %v1358_v45  ;;  %v1409_v45 = vld [vmem:[#allocation8 + $0xf0] ss:$28 sps:$4 sm:$0xff]  }
  0x5f   :  { %980 = vmatpush2.bf16.msra.mxu0 %v1348_v41  ;;  %v1404_v41 = vld [vmem:[#allocation8 + $0x128] ss:$28 sps:$4 sm:$0xff]  }
  0x60   :  { %981 = vmatprep.subr.bf16.mxu0 %v1356_v43  ;;  %v1411_v43 = vld [vmem:[#allocation8 + $0xf4] ss:$28 sps:$4 sm:$0xff]  }
  0x61   :  { %941 = vmatpush2.bf16.msra.mxu1 %v1363_v48  ;;  %v1417_v48 = vld [vmem:[#allocation8 + $0x280] ss:$28 sps:$4 sm:$0xff]  }
  0x62   :  { %942 = vmatprep.subr.bf16.mxu1 %v1364_v49  ;;  %v1414_v49 = vld [vmem:[#allocation8 + $0xb8] ss:$28 sps:$4 sm:$0xff]  }
  0x63   :  { %982 = vmatpush2.bf16.msra.mxu0 %v1354_v46  ;;  %v1413_v46 = vld [vmem:[#allocation8 + $0xf8] ss:$28 sps:$4 sm:$0xff]  }
  0x64   :  { %983 = vmatprep.subr.bf16.mxu0 %v1362_v47  ;;  %v1416_v47 = vld [vmem:[#allocation8 + $0xbc] ss:$28 sps:$4 sm:$0xff]  }
  0x65   :  { %943 = vmatpush2.bf16.msra.mxu1 %v1369_v52  ;;  %v1422_v52 = vld [vmem:[#allocation8 + $0x248] ss:$28 sps:$4 sm:$0xff]  }
  0x66   :  { %944 = vmatprep.subr.bf16.mxu1 %v1370_v53  ;;  %v1419_v53 = vld [vmem:[#allocation8 + $0x80] ss:$28 sps:$4 sm:$0xff]  }
  0x67   :  { %984 = vmatpush2.bf16.msra.mxu0 %v1360_v50  ;;  %v1418_v50 = vld [vmem:[#allocation8 + $0xc0] ss:$28 sps:$4 sm:$0xff]  }
  0x68   :  { %985 = vmatprep.subr.bf16.mxu0 %v1368_v51  ;;  %v1421_v51 = vld [vmem:[#allocation8 + $0x84] ss:$28 sps:$4 sm:$0xff]  }
  0x69   :  { %945 = vmatpush2.bf16.msra.mxu1 %v1375_v56  ;;  %v1427_v56 = vld [vmem:[#allocation8 + $0x210] ss:$28 sps:$4 sm:$0xff]  }
  0x6a   :  { %946 = vmatprep.subr.bf16.mxu1 %v1376_v58  ;;  %v1428_v58 = vld [vmem:[#allocation8 + $0x50] ss:$28 sps:$4 sm:$0xff]  }
  0x6b   :  { %986 = vmatpush2.bf16.msra.mxu0 %v1366_v54  ;;  %v1423_v54 = vld [vmem:[#allocation8 + $0x88] ss:$28 sps:$4 sm:$0xff]  }
  0x6c   :  { %987 = vmatprep.subr.bf16.mxu0 %v1374_v55  ;;  %v1426_v55 = vld [vmem:[#allocation8 + $0x4c] ss:$28 sps:$4 sm:$0xff]  }
  0x6d   :  { %947 = vmatpush2.bf16.msra.mxu1 %v1381_v61  ;;  %v1429_v61 = vld [vmem:[#allocation8 + $0x10] ss:$28 sps:$4 sm:$0xff]  }
  0x6e   :  { %948 = vmatprep.subr.bf16.mxu1 %v1382_v62  ;;  %v1433_v62 = vld [vmem:[#allocation8 + $0x18] ss:$28 sps:$4 sm:$0xff]  }
  0x6f   :  { %988 = vmatpush2.bf16.msra.mxu0 %v1372_v57  ;;  %v1424_v57 = vld [vmem:[#allocation8 + $0x48] ss:$28 sps:$4 sm:$0xff]  }
  0x70   :  { %989 = vmatprep.subr.bf16.mxu0 %v1380_v59  ;;  %v1431_v59 = vld [vmem:[#allocation8 + $0x14] ss:$28 sps:$4 sm:$0xff]  }
  0x71   :  { %949 = vmatpush2.bf16.msra.mxu1 %v1387_v1  ;;  %v1439_v1 = vld [vmem:[#allocation8 + $0x324] ss:$28 sps:$4 sm:$0xff]  }
  0x72   :  { %950 = vmatprep.subr.bf16.mxu1 %v1388_v2  ;;  %v1437_v2 = vld [vmem:[#allocation8 + $0x320] ss:$28 sps:$4 sm:$0xff]  }
  0x73   :  { %990 = vmatpush2.bf16.msra.mxu0 %v1378_v60  ;;  %v1432_v60 = vld [vmem:[#allocation8 + $0x1d8] ss:$28 sps:$4 sm:$0xff]  }
  0x74   :  { %991 = vmatprep.subr.bf16.mxu0 %v1386_v63  ;;  %v1436_v63 = vld [vmem:[#allocation8 + $0x35c] ss:$28 sps:$4 sm:$0xff]  }
  0x75   :  { %951 = vmatpush2.bf16.msra.mxu1 %v1393_v5  ;;  %v1445_v5 = vld [vmem:[#allocation8 + $0x2b4] ss:$28 sps:$4 sm:$0xff]  }
  0x76   :  { %1006 = vmatprep.subr.bf16.mxu1 %v1396_v6  ;;  %v1443_v6 = vld [vmem:[#allocation8 + $0x2b0] ss:$28 sps:$4 sm:$0xff]  }
  0x77   :  { %992 = vmatpush2.bf16.msra.mxu0 %v1384_v0  ;;  %v1434_v0 = vld [vmem:[#allocation8 + $0x358] ss:$28 sps:$4 sm:$0xff]  }
  0x78   :  { %993 = vmatprep.subr.bf16.mxu0 %v1392_v3  ;;  %v1442_v3 = vld [vmem:[#allocation8 + $0x2ec] ss:$28 sps:$4 sm:$0xff]  }
  0x7b   :  { %994 = vmatpush2.bf16.msra.mxu0 %v1390_v4  ;;  %v1440_v4 = vld [vmem:[#allocation8 + $0x2e8] ss:$28 sps:$4 sm:$0xff]  }
  0x7c   :  { %1255 = vmatprep.subr.bf16.mxu0 %v1397_v7  ;;  %v1448_v7 = vld [vmem:[#allocation8 + $0x27c] ss:$28 sps:$4 sm:$0xff]  }
  0xfe   :  { %v156_v15 = vpop.f32.mrf.mxu0 }
  0xff   :  { %v157_v18 = vadd.f32 %v156_v15, %v86_v14  ;;  %v1452_v15 = vld [vmem:[#allocation8 + $0x208] ss:$28 sps:$4 sm:$0xff]  }
 0x100   :  { %v158_v16 = vpop.f32.mrf.mxu0 }
 0x101   :  { %v159_v17 = vadd.f32 %v158_v16, %v90_v13  ;;  %v169_v25 = vmul.f32 0.01, %v157_v18  ;;  %vm165_vm3 = vcmp.gt.f32.partialorder %v157_v18, 0.0  ;;  %v1457_v16 = vld [vmem:[#allocation8 + $0x1d4] ss:$28 sps:$4 sm:$0xff]  }
 0x102   :  { %v160_v19 = vpop.f32.mrf.mxu0 }
 0x103   :  { %v161_v20 = vadd.f32 %v160_v19, %v86_v14  ;;  %v170_v22 = vmul.f32 0.01, %v159_v17  ;;  %vm166_vm2 = vcmp.gt.f32.partialorder %v159_v17, 0.0  ;;  %v173_v30 = vsel %vm165_vm3, %v157_v18, %v169_v25  ;;  %v1454_v14 = vld [vmem:[#allocation8 + $0x20c] ss:$28 sps:$4 sm:$0xff]   ;;  %v1668_v19 = vld [vmem:[%s1692_s4] sm:$0xff] }
 0x104   :  { %v162_v21 = vpop.f32.mrf.mxu0  ;;  %v319_v18 = vsub.s32 2, %v1650_v9  ;;  %s1605_s4 = smov [#allocation10]  }
 0x105   :  { %vm167_vm1 = vcmp.gt.f32.partialorder %v161_v20, 0.0  ;;  %v171_v23 = vmul.f32 0.01, %v161_v20  ;;  %v163_v24 = vadd.f32 %v162_v21, %v90_v13  ;;  %v174_v28 = vsel %vm166_vm2, %v159_v17, %v170_v22  ;;  %v1449_v13 = vld [vmem:[#allocation8 + $0x240] ss:$28 sps:$4 sm:$0xff]   ;;  %s1123_s17 = sshll.u32 %s1605_s4, 4  ;;  %s1124_s17 = int_to_ptr.vmem [resolvable:$true] %s1123_s17 }
 0x106   :  { %v1455_v17 = vld [vmem:[#allocation8 + $0x1d0] ss:$28 sps:$4 sm:$0xff]   ;;  %v312_v21 = vrot.slane %v1668_v19, %v85_v11  ;;  %v320_v22 = vrot.slane %v1668_v19, %v319_v18  ;;  %s1566_s18 = scalar_lea.vmem %s1124_s17, 1792  ;;  %p1571_p7 = scmp.lt.s32.totalorder %s1124_s17, %s1124_s17 }
 0x107   :  { %vm168_vm4 = vcmp.gt.f32.partialorder %v163_v24, 0.0  ;;  %v172_v26 = vmul.f32 0.01, %v163_v24  ;;  %v175_v27 = vsel %vm167_vm1, %v161_v20, %v171_v23  ;;  %v323_v20 = vsub.s32 3, %v1650_v9  ;;  %p1567_p6 = scmp.ne.s32.totalorder %s1124_s17, %s1566_s18  ;;  %p1572_p8 = scmp.lt.s32.totalorder %s1566_s18, %s1566_s18 }
 0x108   :  { %v1658_v34 = vpack.c.bf16 %v175_v27, %v173_v30  ;;  %v316_v23 = vrot.slane %v1668_v19, %v89_v10 }
 0x109   :  { %v176_v29 = vsel %vm168_vm4, %v163_v24, %v172_v26  ;;  %v324_v24 = vrot.slane %v1668_v19, %v323_v20  ;;  %p1573_p9 = por %p1572_p8, %p1571_p7 }
 0x10a   :  { %v178_v31 = vpack.c.bf16 %v176_v29, %v174_v28 }
 0x10b   :  { %p1574_p10 = pnand %p1573_p9, %p1567_p6 }
 0x10c   :  { %952 = vmatprep.mubr.bf16.mxu1 %v178_v31  ;;  %995 = vmatprep.mubr.bf16.mxu0 %v178_v31 }
 0x10d   :  { %953 = vmatmul.mubr.bf16.vlgmr.msra.gmra.mxu1 %v1658_v34  ;;  %996 = vmatmul.mubr.bf16.vlgmr.msra.gmra.mxu0 %v1658_v34 }
 0x10e   :  { %1007 = vmatpush1.bf16.msra.mxu1 %v1394_v32  ;;  %1256 = vmatpush3.bf16.msra.mxu0 %v1398_v33 }
 0x10f   :  { %1038 = vmatprep.mubr.bf16.mxu1 %v178_v31  ;;  %1081 = vmatprep.mubr.bf16.mxu0 %v178_v31 }
 0x110   :  { %1008 = vmatprep.subr.bf16.mxu1 %v1401_v35  ;;  %1257 = vmatprep.subr.bf16.mxu0 %v1402_v36 }
 0x112   :  { %1009 = vmatpush1.bf16.msra.mxu1 %v1399_v37  ;;  %1258 = vmatpush3.bf16.msra.mxu0 %v1403_v38 }
 0x113   :  { %1010 = vmatprep.subr.bf16.mxu1 %v1406_v39  ;;  %1259 = vmatprep.subr.bf16.mxu0 %v1407_v40 }
 0x116   :  { %1011 = vmatpush1.bf16.msra.mxu1 %v1404_v41  ;;  %1260 = vmatpush3.bf16.msra.mxu0 %v1408_v42 }
 0x117   :  { %1012 = vmatprep.subr.bf16.mxu1 %v1411_v43  ;;  %1261 = vmatprep.subr.bf16.mxu0 %v1412_v44 }
 0x11a   :  { %1013 = vmatpush1.bf16.msra.mxu1 %v1409_v45  ;;  %1262 = vmatpush3.bf16.msra.mxu0 %v1413_v46 }
 0x11b   :  { %1014 = vmatprep.subr.bf16.mxu1 %v1416_v47  ;;  %1263 = vmatprep.subr.bf16.mxu0 %v1417_v48  ;;  %v335_v47 = vsub.s32 6, %v1650_v9 }
 0x11e   :  { %1015 = vmatpush1.bf16.msra.mxu1 %v1414_v49  ;;  %1264 = vmatpush3.bf16.msra.mxu0 %v1418_v50  ;;  %v336_v49 = vrot.slane %v1668_v19, %v335_v47 }
 0x11f   :  { %1016 = vmatprep.subr.bf16.mxu1 %v1421_v51  ;;  %1265 = vmatprep.subr.bf16.mxu0 %v1422_v52 }
 0x122   :  { %1017 = vmatpush1.bf16.msra.mxu1 %v1419_v53  ;;  %1266 = vmatpush3.bf16.msra.mxu0 %v1423_v54 }
 0x123   :  { %1018 = vmatprep.subr.bf16.mxu1 %v1426_v55  ;;  %1267 = vmatprep.subr.bf16.mxu0 %v1427_v56 }
 0x126   :  { %1019 = vmatpush1.bf16.msra.mxu1 %v1424_v57  ;;  %1268 = vmatpush3.bf16.msra.mxu0 %v1428_v58 }
 0x127   :  { %1020 = vmatprep.subr.bf16.mxu1 %v1431_v59  ;;  %1269 = vmatprep.subr.bf16.mxu0 %v1432_v60  ;;  %v327_v59 = vsub.s32 4, %v1650_v9  ;;  %v331_v60 = vsub.s32 5, %v1650_v9 }
 0x12a   :  { %1021 = vmatpush1.bf16.msra.mxu1 %v1429_v61  ;;  %1270 = vmatpush3.bf16.msra.mxu0 %v1433_v62  ;;  %v328_v61 = vrot.slane %v1668_v19, %v327_v59  ;;  %v332_v62 = vrot.slane %v1668_v19, %v331_v60 }
 0x12b   :  { %1022 = vmatprep.subr.bf16.mxu1 %v1436_v63 }
 0x12d   :  { %1082 = vmatmul.mubr.bf16.vlgmr.msra.gmra.mxu0 %v1658_v34 }
 0x12e   :  { %1023 = vmatpush2.bf16.msra.mxu1 %v1434_v0 }
 0x12f   :  { %1024 = vmatprep.subr.bf16.mxu1 %v1439_v1 }
 0x132   :  { %1025 = vmatpush2.bf16.msra.mxu1 %v1437_v2 }
 0x133   :  { %1026 = vmatprep.subr.bf16.mxu1 %v1442_v3 }
 0x136   :  { %1027 = vmatpush2.bf16.msra.mxu1 %v1440_v4 }
 0x137   :  { %1028 = vmatprep.subr.bf16.mxu1 %v1445_v5 }
 0x13a   :  { %1029 = vmatpush2.bf16.msra.mxu1 %v1443_v6 }
 0x13b   :  { %1030 = vmatprep.subr.bf16.mxu1 %v1448_v7 }
 0x13e   :  { %1031 = vmatpush2.bf16.msra.mxu1 %v1446_v8 }
 0x13f   :  { %1032 = vmatprep.subr.bf16.mxu1 %v1451_v12 }
 0x142   :  { %1033 = vmatpush2.bf16.msra.mxu1 %v1449_v13 }
 0x143   :  { %1034 = vmatprep.subr.bf16.mxu1 %v1454_v14 }
 0x146   :  { %1035 = vmatpush2.bf16.msra.mxu1 %v1452_v15 }
 0x147   :  { %1036 = vmatprep.subr.bf16.mxu1 %v1457_v16 }
 0x14a   :  { %1037 = vmatpush2.bf16.msra.mxu1 %v1455_v17 }
 0x14d   :  { %1039 = vmatmul.mubr.bf16.vlgmr.msra.gmra.mxu1 %v1658_v34 }
 0x1cd   :  { %v954_v25 = vpop.f32.mrf.mxu1  ;;  %v997_v26 = vpop.f32.mrf.mxu0 }
 0x1ce   :  { %v955_v27 = vadd.f32 %v954_v25, %v312_v21  ;;  %v998_v28 = vadd.f32 %v997_v26, %v320_v22 }
 0x1cf   :  { %v956_v29 = vpop.f32.mrf.mxu1  ;;  %v999_v30 = vpop.f32.mrf.mxu0 }
 0x1d0   :  { %1458 = vtanh.f32 %v955_v27  ;;  %v957_v31 = vadd.f32 %v956_v29, %v316_v23  ;;  %v1000_v32 = vadd.f32 %v999_v30, %v324_v24 }
 0x1d1   :  { %1460 = vtanh.f32 %v998_v28  ;;  %v958_v33 = vpop.f32.mrf.mxu1  ;;  %v1001_v11 = vpop.f32.mrf.mxu0 }
 0x1d2   :  { %1462 = vtanh.f32 %v957_v31  ;;  %v959_v34 = vadd.f32 %v958_v33, %v312_v21  ;;  %v1002_v35 = vadd.f32 %v1001_v11, %v320_v22 }
 0x1d3   :  { %1464 = vtanh.f32 %v1000_v32  ;;  %v960_v36 = vpop.f32.mrf.mxu1  ;;  %v1003_v10 = vpop.f32.mrf.mxu0 }
 0x1d4   :  { %1466 = vtanh.f32 %v959_v34  ;;  %v961_v37 = vadd.f32 %v960_v36, %v316_v23  ;;  %v1004_v38 = vadd.f32 %v1003_v10, %v324_v24 }
 0x1d5   :  { %1468 = vtanh.f32 %v1002_v35 }
 0x1d6   :  { %1470 = vtanh.f32 %v961_v37 }
 0x1d7   :  { %1472 = vtanh.f32 %v1004_v38 }
 0x1dd   :  { %v1459_v39 = vpop.eup %1458 }
 0x1de   :  { %v1461_v40 = vpop.eup %1460  ;;  %1104 = vst [vmem:[#allocation10] sm:$0xff] %v1459_v39 }
 0x1df   :  { %v1463_v41 = vpop.eup %1462  ;;  %1106 = vst [vmem:[#allocation10 + $0x10] sm:$0xff] %v1461_v40 }
 0x1e0   :  { %v1465_v42 = vpop.eup %1464  ;;  %1105 = vst [vmem:[#allocation10 + $0x8] sm:$0xff] %v1463_v41 }
 0x1e1   :  { %v1467_v43 = vpop.eup %1466  ;;  %1107 = vst [vmem:[#allocation10 + $0x18] sm:$0xff] %v1465_v42 }
 0x1e2   :  { %v1469_v44 = vpop.eup %1468  ;;  %1111 = vst [vmem:[#allocation10 + $0x38] sm:$0xff] %v1467_v43 }
 0x1e3   :  { %v1471_v45 = vpop.eup %1470  ;;  %1113 = vst [vmem:[#allocation10 + $0x48] sm:$0xff] %v1469_v44 }
 0x1e4   :  { %v1473_v46 = vpop.eup %1472  ;;  %1112 = vst [vmem:[#allocation10 + $0x40] sm:$0xff] %v1471_v45 }
 0x1e5   :  { %1114 = vst [vmem:[#allocation10 + $0x50] sm:$0xff] %v1473_v46 }
 0x1ed   :  { %v1271_v48 = vpop.f32.mrf.mxu0 }
 0x1ef   :  { %v1272_v50 = vpop.f32.mrf.mxu0 }
 0x1f0   :  { %v1273_v51 = vadd.f32 %v1272_v50, %v1271_v48 }
 0x1f1   :  { %v1274_v52 = vpop.f32.mrf.mxu0 }
 0x1f2   :  { %v1084_v53 = vadd.f32 %v1273_v51, %v336_v49 }
 0x1f3   :  { %v1275_v54 = vpop.f32.mrf.mxu0 }
 0x1f4   :  { %1474 = vtanh.f32 %v1084_v53  ;;  %v1276_v55 = vadd.f32 %v1275_v54, %v1274_v52 }
 0x1f6   :  { %v1087_v56 = vadd.f32 %v1276_v55, %v336_v49 }
 0x1f8   :  { %1476 = vtanh.f32 %v1087_v56 }
 0x201   :  { %v1475_v57 = vpop.eup %1474 }
 0x202   :  { %1110 = vst [vmem:[#allocation10 + $0x30] sm:$0xff] %v1475_v57 }
 0x205   :  { %v1477_v58 = vpop.eup %1476 }
 0x206   :  { %1117 = vst [vmem:[#allocation10 + $0x68] sm:$0xff] %v1477_v58 }
 0x20d   :  { %v1040_v63 = vpop.f32.mrf.mxu1 }
 0x20e   :  { %v1041_v0 = vadd.f32 %v1040_v63, %v328_v61 }
 0x20f   :  { %v1042_v1 = vpop.f32.mrf.mxu1 }
 0x210   :  { %1478 = vtanh.f32 %v1041_v0  ;;  %v1043_v2 = vadd.f32 %v1042_v1, %v332_v62 }
 0x211   :  { %v1044_v3 = vpop.f32.mrf.mxu1 }
 0x212   :  { %1480 = vtanh.f32 %v1043_v2  ;;  %v1045_v4 = vadd.f32 %v1044_v3, %v328_v61 }
 0x213   :  { %v1046_v5 = vpop.f32.mrf.mxu1 }
 0x214   :  { %1482 = vtanh.f32 %v1045_v4  ;;  %v1047_v6 = vadd.f32 %v1046_v5, %v332_v62 }
 0x216   :  { %1484 = vtanh.f32 %v1047_v6 }
 0x21d   :  { %v1479_v7 = vpop.eup %1478 }
 0x21e   :  { %1108 = vst [vmem:[#allocation10 + $0x20] sm:$0xff] %v1479_v7 }
 0x21f   :  { %v1481_v9 = vpop.eup %1480 }
 0x220   :  { %1109 = vst [vmem:[#allocation10 + $0x28] sm:$0xff] %v1481_v9 }
 0x221   :  { %v1483_v8 = vpop.eup %1482 }
 0x222   :  { %1115 = vst [vmem:[#allocation10 + $0x58] sm:$0xff] %v1483_v8 }
 0x223   :  { %v1485_v12 = vpop.eup %1484 }
 0x224   :  { %1116 = vst [vmem:[#allocation10 + $0x60] sm:$0xff] %v1485_v12 }
 0x225   :  { %1577 = shalt.err (!%p1574_p10)
}
 0x226   :  { %s1606_s19 = smov 896   ;;  %s1607_s20 = smov 56  }
 0x227   :  { %1129 = dma.vmem_to_hbm [thread:$0]  %s1124_s17, 1792, %s1693_s5, [#allocation4], %s1606_s19, %s1606_s19, %s1607_s20  }
 0x228   :  { %1592 = dma.done.wait [#allocation4], 1792  }
 0x229   :  { %1593 = vsyncadd [#allocation4], 4294965504 }
 0x22a   :  { %1133 = vsyncpa [#allocation3], 1 }
 0x22b   :  { %1134 = vsyncpa [#allocation6], 1 }
 0x22c   :  { %1135 = vsyncpa [#allocation9], 1 }
 0x22d   :  { %1136 = vsyncpa [#allocation4], 1 }

</bundles_post_ra>
